<compile_context>
chip_gen: v7x
topology: tpu7x:2x2x1
jax: 0.10.0
libtpu: 0.0.40
codegen_flags: <defaults>
</compile_context>

<pallas_src>
import functools

import jax
import jax.numpy as jnp
from jax.experimental import pallas as pl
from jax.experimental.pallas import tpu as pltpu  # noqa: F401  (TPU backend)

# Contract dim 1 of x/h with dim 1 of W ([out, in] PyTorch layout) == x @ W.T
_CONTRACT_LAST = (((1,), (1,)), ((), ()))


def _mlp_kernel(x_ref, w1_ref, w2_ref, w3_ref, b_ref, o_ref):
    # Layer 1: K = 1024. x cast to bf16 in-kernel (one VPU op); MXU bf16 x bf16
    # with f32 accumulation.
    x_bf = x_ref[...].astype(jnp.bfloat16)
    h = jax.lax.dot_general(x_bf, w1_ref[...], _CONTRACT_LAST,
                            preferred_element_type=jnp.float32)
    h = jnp.maximum(h + b_ref[0:1, :], 0.0)          # f32 VPU (v5e-safe)

    # Layer 2: 256x256, bf16 operands, f32 accumulator.
    h = jax.lax.dot_general(h.astype(jnp.bfloat16), w2_ref[...], _CONTRACT_LAST,
                            preferred_element_type=jnp.float32)
    h = jnp.maximum(h + b_ref[1:2, :], 0.0)

    # Layer 3: logits, width = num_classes (static).
    h = jax.lax.dot_general(h.astype(jnp.bfloat16), w3_ref[...], _CONTRACT_LAST,
                            preferred_element_type=jnp.float32)
    o_ref[...] = (h + b_ref[2:3, :h.shape[1]]).astype(o_ref.dtype)


def _full_spec(shape):
    # Single grid point: every operand is one full-array block in VMEM.
    return pl.BlockSpec(shape, lambda: tuple(0 for _ in shape))


def prepare_params(params, num_classes=10):
    """One-time param prep (call once at load time, NOT per forward):
    pre-cast all weights to bf16 and pack the three biases into one f32 slab."""
    w1, b1, w2, b2, w3, b3 = params
    H = w1.shape[0]                              # hidden = 256
    bias_pack = jnp.zeros((3, H), jnp.float32)
    bias_pack = bias_pack.at[0, :].set(b1)
    bias_pack = bias_pack.at[1, :].set(b2)
    bias_pack = bias_pack.at[2, :num_classes].set(b3)
    return (w1.astype(jnp.bfloat16),
            w2.astype(jnp.bfloat16),
            w3.astype(jnp.bfloat16),
            bias_pack)


@functools.partial(jax.jit, static_argnames=("num_classes",))
def custom_mlp1_forward(x, prepared, num_classes=10):
    """x: [B, C, H, W] float32. prepared = prepare_params(params).
    Returns logits [B, num_classes] float32.  Exactly one pallas_call per
    forward; no per-call casts/packing."""
    w1_bf, w2_bf, w3_bf, bias_pack = prepared
    B = x.shape[0]
    D = w1_bf.shape[1]                 # prod(img_size)
    x2d = x.reshape(B, D)              # == torch .view(-1, prod_size), free reshape

    out = pl.pallas_call(
        _mlp_kernel,
        out_shape=jax.ShapeDtypeStruct((B, num_classes), jnp.float32),
        in_specs=[
            _full_spec(x2d.shape),
            _full_spec(w1_bf.shape),
            _full_spec(w2_bf.shape),
            _full_spec(w3_bf.shape),
            _full_spec(bias_pack.shape),
        ],
        out_specs=_full_spec((B, num_classes)),
    )(x2d, w1_bf, w2_bf, w3_bf, bias_pack)
    return out


def init_params(key, prod_size, num_classes=10):
    """Deterministic init mirroring nn.Linear ([out, in] weights, [out] biases)."""
    dims = [(prod_size, 256), (256, 256), (256, num_classes)]
    params = []
    for i, (fan_in, fan_out) in enumerate(dims):
        kw, kb = jax.random.split(jax.random.fold_in(key, i))
        bound = 1.0 / jnp.sqrt(float(fan_in))
        w = jax.random.uniform(kw, (fan_out, fan_in), jnp.float32, -bound, bound)
        b = jax.random.uniform(kb, (fan_out,), jnp.float32, -bound, bound)
        params += [w, b]
    return tuple(params)


def reference_forward_f32(x, params):
    """Pure-f32 reference matching the PyTorch module exactly."""
    w1, b1, w2, b2, w3, b3 = params
    h = x.reshape(x.shape[0], -1)
    h = jnp.maximum(h @ w1.T + b1, 0.0)
    h = jnp.maximum(h @ w2.T + b2, 0.0)
    return h @ w3.T + b3


def reference_forward_bf16(x, params):
    """Reference that mirrors the kernel's bf16 MXU feed on all three layers."""
    w1, b1, w2, b2, w3, b3 = params

    def dot_bf16(a, w):
        return jnp.dot(a.astype(jnp.bfloat16), w.astype(jnp.bfloat16).T,
                       preferred_element_type=jnp.float32)

    h = x.reshape(x.shape[0], -1)
    h = jnp.maximum(dot_bf16(h, w1) + b1, 0.0)
    h = jnp.maximum(dot_bf16(h, w2) + b2, 0.0)
    return dot_bf16(h, w3) + b3


if __name__ == "__main__":
    key = jax.random.PRNGKey(0)
    img_size = (4, 16, 16)          # C, H, W
    batch = 2
    num_classes = 10
    prod_size = 4 * 16 * 16         # 1024

    kx, kp = jax.random.split(key)
    x = jax.random.normal(kx, (batch,) + img_size, dtype=jnp.float32)
    params = init_params(kp, prod_size, num_classes)

    # One-time weight prep (bf16 cast + bias packing), NOT in the per-call path.
    prepared = jax.block_until_ready(prepare_params(params, num_classes))

    out = custom_mlp1_forward(x, prepared, num_classes=num_classes)
    out = jax.block_until_ready(out)
    assert out.shape == (batch, num_classes)

    # Tight check vs. a numerically-equivalent reference (bf16 operands, f32 acc).
    ref_matched = reference_forward_bf16(x, params)
    assert jnp.allclose(out, ref_matched, atol=3e-3, rtol=3e-3)

    # Band check vs. the exact-f32 PyTorch semantics (only deviation is the
    # bf16 rounding of x/h and the weight slabs).
    ref_f32 = reference_forward_f32(x, params)
    assert jnp.allclose(out, ref_f32, atol=1.5e-1, rtol=5e-2)

    print("KERNEL_OK")
</pallas_src>

<mosaic_0001>
module attributes {stable_mosaic.version = 11 : i64} {
  func.func @_mlp_kernel(%arg0: memref<2x1024xf32, #tpu.memory_space<vmem>>, %arg1: memref<256x1024xbf16, #tpu.memory_space<vmem>>, %arg2: memref<256x256xbf16, #tpu.memory_space<vmem>>, %arg3: memref<10x256xbf16, #tpu.memory_space<vmem>>, %arg4: memref<3x256xf32, #tpu.memory_space<vmem>>, %arg5: memref<2x10xf32, #tpu.memory_space<vmem>>) attributes {dimension_semantics = [], scalar_prefetch = 0 : i64, scratch_operands = 0 : i64, tpu.core_type = #tpu.core_type<tc>} {
    %c0 = arith.constant 0 : index
    %c0_0 = arith.constant 0 : index
    %0 = vector.load %arg0[%c0, %c0_0] : memref<2x1024xf32, #tpu.memory_space<vmem>>, vector<2x1024xf32>
    %1 = arith.truncf %0 : vector<2x1024xf32> to vector<2x1024xbf16>
    %c0_1 = arith.constant 0 : index
    %c0_2 = arith.constant 0 : index
    %2 = vector.load %arg1[%c0_1, %c0_2] : memref<256x1024xbf16, #tpu.memory_space<vmem>>, vector<256x1024xbf16>
    %cst = arith.constant dense<0.000000e+00> : vector<2x256xf32>
    %3 = tpu.matmul %1, %2, %cst {dimension_numbers = #tpu.dot_dimension_numbers<[1], [1], [0], [0], [0, 0, 1, 0], [], []>} : vector<2x1024xbf16>, vector<256x1024xbf16>, vector<2x256xf32> -> vector<2x256xf32>
    %c0_3 = arith.constant 0 : index
    %c0_4 = arith.constant 0 : index
    %4 = vector.load %arg4[%c0_3, %c0_4] : memref<3x256xf32, #tpu.memory_space<vmem>>, vector<1x256xf32>
    %5 = vector.broadcast %4 : vector<1x256xf32> to vector<2x256xf32>
    %6 = arith.addf %3, %5 : vector<2x256xf32>
    %cst_5 = arith.constant 0.000000e+00 : f32
    %7 = vector.broadcast %cst_5 : f32 to vector<2x256xf32>
    %8 = arith.maximumf %6, %7 : vector<2x256xf32>
    %9 = arith.truncf %8 : vector<2x256xf32> to vector<2x256xbf16>
    %c0_6 = arith.constant 0 : index
    %c0_7 = arith.constant 0 : index
    %10 = vector.load %arg2[%c0_6, %c0_7] : memref<256x256xbf16, #tpu.memory_space<vmem>>, vector<256x256xbf16>
    %cst_8 = arith.constant dense<0.000000e+00> : vector<2x256xf32>
    %11 = tpu.matmul %9, %10, %cst_8 {dimension_numbers = #tpu.dot_dimension_numbers<[1], [1], [0], [0], [0, 0, 1, 0], [], []>} : vector<2x256xbf16>, vector<256x256xbf16>, vector<2x256xf32> -> vector<2x256xf32>
    %c1 = arith.constant 1 : index
    %c0_9 = arith.constant 0 : index
    %12 = vector.load %arg4[%c1, %c0_9] : memref<3x256xf32, #tpu.memory_space<vmem>>, vector<1x256xf32>
    %13 = vector.broadcast %12 : vector<1x256xf32> to vector<2x256xf32>
    %14 = arith.addf %11, %13 : vector<2x256xf32>
    %cst_10 = arith.constant 0.000000e+00 : f32
    %15 = vector.broadcast %cst_10 : f32 to vector<2x256xf32>
    %16 = arith.maximumf %14, %15 : vector<2x256xf32>
    %17 = arith.truncf %16 : vector<2x256xf32> to vector<2x256xbf16>
    %c0_11 = arith.constant 0 : index
    %c0_12 = arith.constant 0 : index
    %18 = vector.load %arg3[%c0_11, %c0_12] : memref<10x256xbf16, #tpu.memory_space<vmem>>, vector<10x256xbf16>
    %cst_13 = arith.constant dense<0.000000e+00> : vector<2x10xf32>
    %19 = tpu.matmul %17, %18, %cst_13 {dimension_numbers = #tpu.dot_dimension_numbers<[1], [1], [0], [0], [0, 0, 1, 0], [], []>} : vector<2x256xbf16>, vector<10x256xbf16>, vector<2x10xf32> -> vector<2x10xf32>
    %c2 = arith.constant 2 : index
    %c0_14 = arith.constant 0 : index
    %20 = vector.load %arg4[%c2, %c0_14] : memref<3x256xf32, #tpu.memory_space<vmem>>, vector<1x10xf32>
    %21 = vector.broadcast %20 : vector<1x10xf32> to vector<2x10xf32>
    %22 = arith.addf %19, %21 : vector<2x10xf32>
    %c0_15 = arith.constant 0 : index
    %c0_16 = arith.constant 0 : index
    %23 = vector.load %arg5[%c0_15, %c0_16] : memref<2x10xf32, #tpu.memory_space<vmem>>, vector<2x10xf32>
    tpu.vector_store %arg5[%c0_15, %c0_16], %22 {strides = array<i32>} : memref<2x10xf32, #tpu.memory_space<vmem>>, vector<2x10xf32>,
    return
  }
}

</mosaic_0001>

<bundles_post_ra>
// kernel: custom_mlp1_forward.1
= control target key start
LH: loop header
LB: loop body
LE: loop exit
PB: predicated region body
PF: predicated region fallthrough
CT: control target
= control target key end

     0   :  { %10 = vsyncpa [#allocation3], 0  ;;  %s1820_s0 = inlined_call_operand.vmem [shape: f32[2,1024], index: 0, kind: input, shape index: {}]   ;;  %s1821_s1 = inlined_call_operand.hbm [shape: bf16[256,1024], index: 1, kind: input, shape index: {}]   ;;  %s1822_s2 = inlined_call_operand.hbm [shape: bf16[256,256], index: 2, kind: input, shape index: {}]   ;;  %s1823_s3 = inlined_call_operand.vmem [shape: bf16[10,256], index: 3, kind: input, shape index: {}]   ;;  %s1824_s4 = inlined_call_operand.vmem [shape: f32[3,256], index: 4, kind: input, shape index: {}]   ;;  %s1825_s5 = inlined_call_operand.hbm [shape: f32[2,10], index: 5, kind: output, shape index: {}]  }
   0x1   :  { %11 = vsyncpa [#allocation6], 0 }
   0x2   :  { %12 = vsyncpa [#allocation4], 0  ;;  %s1686_s18 = smov [#allocation2]   ;;  %s1614_s22 = scalar_lea.hbm %s1821_s1, 16384 }
   0x3   :  { %s20_s19 = sshll.u32 %s1686_s18, 4  ;;  %p1615_p0 = scmp.ne.s32.totalorder %s1821_s1, %s1614_s22  ;;  %s21_s19 = int_to_ptr.vmem [resolvable:$true] %s20_s19 }
   0x4   :  { %p1618_p1 = scmp.lt.u32.totalorder %s1614_s22, %s1821_s1 }
   0x6   :  { %p1620_p2 = pnand %p1618_p1, %p1615_p0 }
   0x8   :  { %1623 = shalt.err (!%p1620_p2)
}
   0x9   :  { %s1624_s27 = scalar_lea.vmem %s21_s19, 16384  ;;  %p1629_p4 = scmp.lt.s32.totalorder %s21_s19, %s21_s19 }
   0xa   :  { %p1625_p3 = scmp.ne.s32.totalorder %s21_s19, %s1624_s27  ;;  %p1630_p5 = scmp.lt.s32.totalorder %s1624_s27, %s1624_s27 }
   0xc   :  { %p1631_p6 = por %p1630_p5, %p1629_p4 }
   0xe   :  { %p1632_p7 = pnand %p1631_p6, %p1625_p3 }
  0x10   :  { %1635 = shalt.err (!%p1632_p7)
}
  0x11   :  { %s1687_s28 = smov 512   ;;  %s1688_s29 = smov 32  }
  0x12   :  { %26 = dma.hbm_to_vmem [thread:$0]  %s1821_s1, 16384, %s21_s19, [#allocation3], %s1687_s28, %s1687_s28, %s1688_s29  }
  0x13   :  { %s1689_s7 = smov [#allocation5]   ;;  %s1636_s11 = scalar_lea.hbm %s1822_s2, 4096 }
  0x14   :  { %s32_s8 = sshll.u32 %s1689_s7, 4  ;;  %p1637_p8 = scmp.ne.s32.totalorder %s1822_s2, %s1636_s11  ;;  %s33_s8 = int_to_ptr.vmem [resolvable:$true] %s32_s8 }
  0x15   :  { %p1640_p9 = scmp.lt.u32.totalorder %s1636_s11, %s1822_s2 }
  0x17   :  { %p1642_p10 = pnand %p1640_p9, %p1637_p8 }
  0x19   :  { %1645 = shalt.err (!%p1642_p10)
}
  0x1a   :  { %s1646_s16 = scalar_lea.vmem %s33_s8, 4096  ;;  %p1651_p12 = scmp.lt.s32.totalorder %s33_s8, %s33_s8 }
  0x1b   :  { %p1647_p11 = scmp.ne.s32.totalorder %s33_s8, %s1646_s16  ;;  %p1652_p13 = scmp.lt.s32.totalorder %s1646_s16, %s1646_s16 }
  0x1d   :  { %p1653_p0 = por %p1652_p13, %p1651_p12 }
  0x1f   :  { %p1654_p1 = pnand %p1653_p0, %p1647_p11 }
  0x21   :  { %1657 = shalt.err (!%p1654_p1)
}
  0x22   :  { %s1690_s1 = smov 128   ;;  %s1691_s17 = smov 8  }
  0x23   :  { %38 = dma.hbm_to_vmem [thread:$0]  %s1822_s2, 4096, %s33_s8, [#allocation6], %s1690_s1, %s1690_s1, %s1691_s17  }
  0x24   :  { %1680 = dma.done.wait [#allocation3], 16384  }
  0x25   :  { %1681 = vsyncadd [#allocation3], 4294950912 }
  0x26   :  { %1682 = dma.done.wait [#allocation6], 4096  }
  0x27   :  { %1683 = vsyncadd [#allocation6], 4294963200  ;;  %v105_v0 = vld [vmem:[#allocation2 + $0x8] sm:$0xff]  ;;  %v1692_v6 = vmov 1983009808   ;;  %v58_v8 = vlaneseq  ;;  %v1756_v17 = vld [vmem:[%s1820_s0] sm:$0xff] }
  0x28   :  { %v109_v1 = vld [vmem:[#allocation2 + $0x28] sm:$0xff]  ;;  %v56_v7 = vunpack.c.l.s4 %v1692_v6  ;;  %v54_v18 = vcombine.high %v1756_v17, %v1756_v17  ;;  %s1693_s6 = smov [#allocation7]   ;;  %vm1359_vm0 = vcmask 74752  }
  0x29   :  { %v113_v2 = vld [vmem:[#allocation2 + $0x48] sm:$0xff]  ;;  %v1380_v3 = vcombine.high %v105_v0, %v109_v1  ;;  %v1379_v4 = vcombine.low %v105_v0, %v109_v1  ;;  %v1748_v11 = vshrl.u32 %v58_v8, 7  ;;  %s1367_s7 = sshll.u32 %s1693_s6, 4  ;;  %s1368_s7 = int_to_ptr.vmem [resolvable:$true] %s1367_s7 }
  0x2a   :  { %v117_v5 = vld [vmem:[#allocation2 + $0x68] sm:$0xff]  ;;  %v57_v10 = vunpack.c.0.s8 %v56_v7  ;;  %s1658_s8 = scalar_lea.vmem %s1368_s7, 32  ;;  %p1663_p3 = scmp.lt.s32.totalorder %s1368_s7, %s1368_s7 }
  0x2b   :  { %v1388_v9 = vcombine.high %v113_v2, %v117_v5  ;;  %925 = vmatprep.subr.bf16.mxu0 %v1380_v3  ;;  %v121_v12 = vld [vmem:[#allocation2 + $0x88] sm:$0xff]  ;;  %v1387_v14 = vcombine.low %v113_v2, %v117_v5  ;;  %p1659_p2 = scmp.ne.s32.totalorder %s1368_s7, %s1658_s8  ;;  %p1664_p4 = scmp.lt.s32.totalorder %s1658_s8, %s1658_s8 }
  0x2c   :  { %926 = vmatpush1.bf16.xpose.msra.mxu0 %v1379_v4  ;;  %v125_v13 = vld [vmem:[#allocation2 + $0xa8] sm:$0xff]  ;;  %v1751_v16 = vsub.s32 %v57_v10, %v1748_v11  ;;  %v106_v10 = vld [vmem:[#allocation2 + $0x10] sm:$0xff] }
  0x2d   :  { %927 = vmatprep.subr.bf16.mxu0 %v1388_v9  ;;  %v1396_v15 = vcombine.high %v121_v12, %v125_v13  ;;  %v129_v19 = vld [vmem:[#allocation2 + $0xc8] sm:$0xff]  ;;  %v1395_v23 = vcombine.low %v121_v12, %v125_v13  ;;  %v110_v12 = vld [vmem:[#allocation2 + $0x30] sm:$0xff]  ;;  %p1665_p5 = por %p1664_p4, %p1663_p3 }
  0x2e   :  { %v133_v20 = vld [vmem:[#allocation2 + $0xe8] sm:$0xff]  ;;  %v1761_v21 = vrot.slane %v54_v18, %v1751_v16  ;;  %v108_v18 = vld [vmem:[#allocation2 + $0x20] sm:$0xff] }
  0x2f   :  { %v1404_v24 = vcombine.high %v129_v19, %v133_v20  ;;  %v137_v26 = vld [vmem:[#allocation2 + $0x108] sm:$0xff]  ;;  %v1403_v28 = vcombine.low %v129_v19, %v133_v20  ;;  %p1666_p6 = pnand %p1665_p5, %p1659_p2 }
  0x30   :  { %v70_v22 = vcombine.high %v1761_v21, %v1761_v21  ;;  %v141_v27 = vld [vmem:[#allocation2 + $0x128] sm:$0xff] }
  0x31   :  { %v1412_v29 = vcombine.high %v137_v26, %v141_v27  ;;  %v145_v30 = vld [vmem:[#allocation2 + $0x148] sm:$0xff]  ;;  %v1411_v32 = vcombine.low %v137_v26, %v141_v27  ;;  %v98_v26 = vpack.c.bf16 %v1761_v21, %v1761_v21 }
  0x32   :  { %v99_v25 = vpack.c.bf16 %v70_v22, %v70_v22  ;;  %v149_v31 = vld [vmem:[#allocation2 + $0x168] sm:$0xff] }
  0x33   :  { %v1420_v33 = vcombine.high %v145_v30, %v149_v31  ;;  %v153_v34 = vld [vmem:[#allocation2 + $0x188] sm:$0xff]  ;;  %v1419_v36 = vcombine.low %v145_v30, %v149_v31  ;;  %v112_v31 = vld [vmem:[#allocation2 + $0x40] sm:$0xff] }
  0x34   :  { %928 = vmatpush1.bf16.xpose.msra.mxu0 %v1387_v14  ;;  %957 = vmatprep.mubr.bf16.mxu0 %v99_v25  ;;  %v157_v35 = vld [vmem:[#allocation2 + $0x1a8] sm:$0xff]  ;;  %v1382_v14 = vcombine.high %v106_v10, %v110_v12  ;;  %v118_v25 = vld [vmem:[#allocation2 + $0x70] sm:$0xff] }
  0x35   :  { %929 = vmatprep.subr.bf16.mxu0 %v1396_v15  ;;  %v1428_v37 = vcombine.high %v153_v34, %v157_v35  ;;  %v161_v38 = vld [vmem:[#allocation2 + $0x1c8] sm:$0xff]  ;;  %v1427_v40 = vcombine.low %v153_v34, %v157_v35  ;;  %v104_v15 = vld [vmem:[#allocation2] sm:$0xff]  ;;  %v122_v35 = vld [vmem:[#allocation2 + $0x90] sm:$0xff] }
  0x36   :  { %v165_v39 = vld [vmem:[#allocation2 + $0x1e8] sm:$0xff]  ;;  %v1378_v19 = vcombine.high %v104_v15, %v108_v18  ;;  %v1377_v20 = vcombine.low %v104_v15, %v108_v18  ;;  %v160_v15 = vld [vmem:[#allocation2 + $0x1c0] sm:$0xff] }
  0x37   :  { %v1436_v41 = vcombine.high %v161_v38, %v165_v39  ;;  %v169_v42 = vld [vmem:[#allocation2 + $0x208] sm:$0xff]  ;;  %v1435_v44 = vcombine.low %v161_v38, %v165_v39  ;;  %v120_v38 = vld [vmem:[#allocation2 + $0x80] sm:$0xff] }
  0x38   :  { %v173_v43 = vld [vmem:[#allocation2 + $0x228] sm:$0xff]  ;;  %884 = vmatprep.subr.bf16.mxu1 %v1378_v19  ;;  %v124_v39 = vld [vmem:[#allocation2 + $0xa0] sm:$0xff] }
  0x39   :  { %v1444_v45 = vcombine.high %v169_v42, %v173_v43  ;;  %v177_v46 = vld [vmem:[#allocation2 + $0x248] sm:$0xff]  ;;  %v1443_v48 = vcombine.low %v169_v42, %v173_v43  ;;  %885 = vmatpush1.bf16.xpose.msra.mxu1 %v1377_v20  ;;  %v130_v42 = vld [vmem:[#allocation2 + $0xd0] sm:$0xff]  ;;  %v164_v18 = vld [vmem:[#allocation2 + $0x1e0] sm:$0xff] }
  0x3a   :  { %v181_v47 = vld [vmem:[#allocation2 + $0x268] sm:$0xff]  ;;  %v134_v43 = vld [vmem:[#allocation2 + $0xf0] sm:$0xff]  ;;  %v1434_v19 = vcombine.high %v160_v15, %v164_v18  ;;  %v1433_v20 = vcombine.low %v160_v15, %v164_v18 }
  0x3b   :  { %v1452_v49 = vcombine.high %v177_v46, %v181_v47  ;;  %v185_v50 = vld [vmem:[#allocation2 + $0x288] sm:$0xff]  ;;  %v1451_v52 = vcombine.low %v177_v46, %v181_v47  ;;  %v128_v46 = vld [vmem:[#allocation2 + $0xc0] sm:$0xff]  ;;  %v226_v18 = vld [vmem:[#allocation2 + $0x3d0] sm:$0xff] }
  0x3c   :  { %930 = vmatpush1.bf16.xpose.msra.mxu0 %v1395_v23  ;;  %v189_v51 = vld [vmem:[#allocation2 + $0x2a8] sm:$0xff]  ;;  %v132_v47 = vld [vmem:[#allocation2 + $0xe0] sm:$0xff] }
  0x3d   :  { %931 = vmatprep.subr.bf16.mxu0 %v1404_v24  ;;  %v1460_v53 = vcombine.high %v185_v50, %v189_v51  ;;  %v193_v54 = vld [vmem:[#allocation2 + $0x2c8] sm:$0xff]  ;;  %v1459_v56 = vcombine.low %v185_v50, %v189_v51  ;;  %v114_v24 = vld [vmem:[#allocation2 + $0x50] sm:$0xff] }
  0x3e   :  { %v197_v55 = vld [vmem:[#allocation2 + $0x2e8] sm:$0xff]  ;;  %v1389_v21 = vcombine.low %v114_v24, %v118_v25  ;;  %v138_v50 = vld [vmem:[#allocation2 + $0x110] sm:$0xff] }
  0x3f   :  { %v1468_v57 = vcombine.high %v193_v54, %v197_v55  ;;  %v201_v58 = vld [vmem:[#allocation2 + $0x308] sm:$0xff]  ;;  %v1467_v60 = vcombine.low %v193_v54, %v197_v55  ;;  %v142_v51 = vld [vmem:[#allocation2 + $0x130] sm:$0xff]  ;;  %v136_v54 = vld [vmem:[#allocation2 + $0x100] sm:$0xff] }
  0x40   :  { %v205_v59 = vld [vmem:[#allocation2 + $0x328] sm:$0xff]  ;;  %v140_v55 = vld [vmem:[#allocation2 + $0x120] sm:$0xff] }
  0x41   :  { %v1476_v61 = vcombine.high %v201_v58, %v205_v59  ;;  %v209_v62 = vld [vmem:[#allocation2 + $0x348] sm:$0xff]  ;;  %v1475_v0 = vcombine.low %v201_v58, %v205_v59  ;;  %v146_v58 = vld [vmem:[#allocation2 + $0x150] sm:$0xff] }
  0x42   :  { %v213_v63 = vld [vmem:[#allocation2 + $0x368] sm:$0xff]  ;;  %v150_v59 = vld [vmem:[#allocation2 + $0x170] sm:$0xff] }
  0x43   :  { %v1484_v1 = vcombine.high %v209_v62, %v213_v63  ;;  %v217_v2 = vld [vmem:[#allocation2 + $0x388] sm:$0xff]  ;;  %v1483_v4 = vcombine.low %v209_v62, %v213_v63  ;;  %v144_v62 = vld [vmem:[#allocation2 + $0x140] sm:$0xff] }
  0x44   :  { %932 = vmatpush1.bf16.xpose.msra.mxu0 %v1403_v28  ;;  %v221_v3 = vld [vmem:[#allocation2 + $0x3a8] sm:$0xff]  ;;  %v1381_v28 = vcombine.low %v106_v10, %v110_v12  ;;  %v148_v63 = vld [vmem:[#allocation2 + $0x160] sm:$0xff]  ;;  %v162_v10 = vld [vmem:[#allocation2 + $0x1d0] sm:$0xff] }
  0x45   :  { %933 = vmatprep.subr.bf16.mxu0 %v1412_v29  ;;  %v1492_v5 = vcombine.high %v217_v2, %v221_v3  ;;  %v225_v6 = vld [vmem:[#allocation2 + $0x3c8] sm:$0xff]  ;;  %v1491_v8 = vcombine.low %v217_v2, %v221_v3  ;;  %v1390_v29 = vcombine.high %v114_v24, %v118_v25  ;;  %v154_v2 = vld [vmem:[#allocation2 + $0x190] sm:$0xff] }
  0x46   :  { %v229_v7 = vld [vmem:[#allocation2 + $0x3e8] sm:$0xff]  ;;  %v158_v3 = vld [vmem:[#allocation2 + $0x1b0] sm:$0xff] }
  0x47   :  { %v1500_v9 = vcombine.high %v225_v6, %v229_v7  ;;  %v1499_v13 = vcombine.low %v225_v6, %v229_v7  ;;  %v1768_v22 = vld [vmem:[%s1820_s0 + $0x8] sm:$0xff]  ;;  %v152_v6 = vld [vmem:[#allocation2 + $0x180] sm:$0xff]  ;;  %v166_v12 = vld [vmem:[#allocation2 + $0x1f0] sm:$0xff] }
  0x48   :  { %v1772_v23 = vrot.slane %v1768_v22, %v1751_v16  ;;  %v156_v7 = vld [vmem:[#allocation2 + $0x1a0] sm:$0xff]  ;;  %v170_v24 = vld [vmem:[#allocation2 + $0x210] sm:$0xff] }
  0x49   :  { %v174_v25 = vld [vmem:[#allocation2 + $0x230] sm:$0xff] }
  0x4a   :  { %v86_v27 = vcombine.high %v1772_v23, %v1772_v23 }
  0x4c   :  { %934 = vmatpush1.bf16.xpose.msra.mxu0 %v1411_v32  ;;  %v101_v30 = vpack.c.bf16 %v86_v27, %v86_v27  ;;  %v116_v32 = vld [vmem:[#allocation2 + $0x60] sm:$0xff]  ;;  %v1446_v27 = vcombine.high %v170_v24, %v174_v25 }
  0x4d   :  { %935 = vmatprep.subr.bf16.mxu0 %v1420_v33  ;;  %v1386_v33 = vcombine.high %v112_v31, %v116_v32  ;;  %v1385_v34 = vcombine.low %v112_v31, %v116_v32  ;;  %v178_v32 = vld [vmem:[#allocation2 + $0x250] sm:$0xff] }
  0x4f   :  { %886 = vmatprep.subr.bf16.mxu1 %v1386_v33  ;;  %v182_v33 = vld [vmem:[#allocation2 + $0x270] sm:$0xff] }
  0x50   :  { %887 = vmatpush1.bf16.xpose.msra.mxu1 %v1385_v34  ;;  %v1445_v34 = vcombine.low %v170_v24, %v174_v25  ;;  %v224_v25 = vld [vmem:[#allocation2 + $0x3c0] sm:$0xff] }
  0x54   :  { %936 = vmatpush1.bf16.xpose.msra.mxu0 %v1419_v36  ;;  %v126_v36 = vld [vmem:[#allocation2 + $0xb0] sm:$0xff] }
  0x55   :  { %937 = vmatprep.subr.bf16.mxu0 %v1428_v37  ;;  %v1398_v37 = vcombine.high %v122_v35, %v126_v36 }
  0x5c   :  { %938 = vmatpush1.bf16.xpose.msra.mxu0 %v1427_v40  ;;  %v1394_v40 = vcombine.high %v120_v38, %v124_v39 }
  0x5d   :  { %939 = vmatprep.subr.bf16.mxu0 %v1436_v41  ;;  %v1393_v41 = vcombine.low %v120_v38, %v124_v39  ;;  %v186_v39 = vld [vmem:[#allocation2 + $0x290] sm:$0xff] }
  0x5e   :  { %888 = vmatprep.subr.bf16.mxu1 %v1394_v40  ;;  %v190_v40 = vld [vmem:[#allocation2 + $0x2b0] sm:$0xff] }
  0x5f   :  { %889 = vmatpush1.bf16.xpose.msra.mxu1 %v1393_v41  ;;  %v1453_v41 = vcombine.low %v178_v32, %v182_v33 }
  0x64   :  { %940 = vmatpush1.bf16.xpose.msra.mxu0 %v1435_v44  ;;  %v1397_v44 = vcombine.low %v122_v35, %v126_v36  ;;  %v1454_v35 = vcombine.high %v178_v32, %v182_v33  ;;  %v176_v36 = vld [vmem:[#allocation2 + $0x240] sm:$0xff] }
  0x65   :  { %941 = vmatprep.subr.bf16.mxu0 %v1444_v45  ;;  %v1406_v45 = vcombine.high %v130_v42, %v134_v43 }
  0x6c   :  { %942 = vmatpush1.bf16.xpose.msra.mxu0 %v1443_v48  ;;  %v1402_v48 = vcombine.high %v128_v46, %v132_v47 }
  0x6d   :  { %943 = vmatprep.subr.bf16.mxu0 %v1452_v49  ;;  %v1401_v49 = vcombine.low %v128_v46, %v132_v47  ;;  %v194_v47 = vld [vmem:[#allocation2 + $0x2d0] sm:$0xff] }
  0x6e   :  { %890 = vmatprep.subr.bf16.mxu1 %v1402_v48  ;;  %v198_v48 = vld [vmem:[#allocation2 + $0x2f0] sm:$0xff] }
  0x6f   :  { %891 = vmatpush1.bf16.xpose.msra.mxu1 %v1401_v49  ;;  %v1461_v49 = vcombine.low %v186_v39, %v190_v40 }
  0x74   :  { %944 = vmatpush1.bf16.xpose.msra.mxu0 %v1451_v52  ;;  %v1405_v52 = vcombine.low %v130_v42, %v134_v43  ;;  %v1462_v42 = vcombine.high %v186_v39, %v190_v40  ;;  %v184_v43 = vld [vmem:[#allocation2 + $0x280] sm:$0xff]  ;;  %v119_v39 = vld [vmem:[#allocation2 + $0x78] sm:$0xff]  ;;  %v100_v40 = vpack.c.bf16 %v1772_v23, %v1772_v23 }
  0x75   :  { %945 = vmatprep.subr.bf16.mxu0 %v1460_v53  ;;  %v1414_v53 = vcombine.high %v138_v50, %v142_v51  ;;  %v131_v23 = vld [vmem:[#allocation2 + $0xd8] sm:$0xff] }
  0x7c   :  { %946 = vmatpush1.bf16.xpose.msra.mxu0 %v1459_v56  ;;  %v1410_v56 = vcombine.high %v136_v54, %v140_v55 }
  0x7d   :  { %947 = vmatprep.subr.bf16.mxu0 %v1468_v57  ;;  %v1409_v57 = vcombine.low %v136_v54, %v140_v55  ;;  %v202_v55 = vld [vmem:[#allocation2 + $0x310] sm:$0xff] }
  0x7e   :  { %892 = vmatprep.subr.bf16.mxu1 %v1410_v56  ;;  %v206_v56 = vld [vmem:[#allocation2 + $0x330] sm:$0xff] }
  0x7f   :  { %893 = vmatpush1.bf16.xpose.msra.mxu1 %v1409_v57  ;;  %v1469_v57 = vcombine.low %v194_v47, %v198_v48 }
  0x84   :  { %948 = vmatpush1.bf16.xpose.msra.mxu0 %v1467_v60  ;;  %v1413_v60 = vcombine.low %v138_v50, %v142_v51  ;;  %v1470_v50 = vcombine.high %v194_v47, %v198_v48  ;;  %v192_v51 = vld [vmem:[#allocation2 + $0x2c0] sm:$0xff] }
  0x85   :  { %949 = vmatprep.subr.bf16.mxu0 %v1476_v61  ;;  %v1422_v61 = vcombine.high %v146_v58, %v150_v59 }
  0x8c   :  { %950 = vmatpush1.bf16.xpose.msra.mxu0 %v1475_v0  ;;  %v1418_v0 = vcombine.high %v144_v62, %v148_v63 }
  0x8d   :  { %951 = vmatprep.subr.bf16.mxu0 %v1484_v1  ;;  %v1417_v1 = vcombine.low %v144_v62, %v148_v63  ;;  %v210_v63 = vld [vmem:[#allocation2 + $0x350] sm:$0xff] }
  0x8e   :  { %894 = vmatprep.subr.bf16.mxu1 %v1418_v0  ;;  %v214_v0 = vld [vmem:[#allocation2 + $0x370] sm:$0xff] }
  0x8f   :  { %895 = vmatpush1.bf16.xpose.msra.mxu1 %v1417_v1  ;;  %v1477_v1 = vcombine.low %v202_v55, %v206_v56 }
  0x94   :  { %952 = vmatpush1.bf16.xpose.msra.mxu0 %v1483_v4  ;;  %v1421_v4 = vcombine.low %v146_v58, %v150_v59  ;;  %v1478_v58 = vcombine.high %v202_v55, %v206_v56  ;;  %v200_v59 = vld [vmem:[#allocation2 + $0x300] sm:$0xff]  ;;  %v1574_v55 = vld [vmem:[#allocation5 + $0x34] ss:$8 sps:$4 sm:$0xff]  }
  0x95   :  { %953 = vmatprep.subr.bf16.mxu0 %v1492_v5  ;;  %v1430_v5 = vcombine.high %v154_v2, %v158_v3  ;;  %v139_v56 = vld [vmem:[#allocation2 + $0x118] sm:$0xff] }
  0x9c   :  { %954 = vmatpush1.bf16.xpose.msra.mxu0 %v1491_v8  ;;  %v1426_v8 = vcombine.high %v152_v6, %v156_v7 }
  0x9d   :  { %955 = vmatprep.subr.bf16.mxu0 %v1500_v9  ;;  %v1425_v9 = vcombine.low %v152_v6, %v156_v7  ;;  %v218_v7 = vld [vmem:[#allocation2 + $0x390] sm:$0xff] }
  0x9e   :  { %896 = vmatprep.subr.bf16.mxu1 %v1426_v8  ;;  %v222_v8 = vld [vmem:[#allocation2 + $0x3b0] sm:$0xff] }
  0x9f   :  { %897 = vmatpush1.bf16.xpose.msra.mxu1 %v1425_v9  ;;  %v1485_v9 = vcombine.low %v210_v63, %v214_v0 }
  0xa0   :  { %898 = vmatprep.subr.bf16.mxu1 %v1434_v19  ;;  %v230_v19 = vld [vmem:[#allocation2 + $0x3f0] sm:$0xff] }
  0xa1   :  { %v1502_v24 = vcombine.high %v226_v18, %v230_v19  ;;  %v1501_v32 = vcombine.low %v226_v18, %v230_v19  ;;  %v1586_v18 = vld [vmem:[#allocation5 + $0x74] ss:$8 sps:$4 sm:$0xff]  }
  0xa2   :  { %v171_v19 = vld [vmem:[#allocation2 + $0x218] sm:$0xff] }
  0xa4   :  { %956 = vmatpush1.bf16.xpose.msra.mxu0 %v1499_v13  ;;  %v1429_v13 = vcombine.low %v154_v2, %v158_v3  ;;  %v1486_v2 = vcombine.high %v210_v63, %v214_v0  ;;  %v208_v3 = vld [vmem:[#allocation2 + $0x340] sm:$0xff]  ;;  %v151_v63 = vld [vmem:[#allocation2 + $0x178] sm:$0xff] }
  0xa5   :  { %966 = vmatprep.subr.bf16.mxu0 %v1382_v14  ;;  %v1438_v14 = vcombine.high %v162_v10, %v166_v12 }
  0xa7   :  { %899 = vmatpush1.bf16.xpose.msra.mxu1 %v1433_v20  ;;  %v1493_v20 = vcombine.low %v218_v7, %v222_v8 }
  0xab   :  { %958 = vmatmul.mubr.bf16.vlgmr.msra.gmra.mrb[0].mxu0 %v98_v26  ;;  %v1437_v26 = vcombine.low %v162_v10, %v166_v12  ;;  %v1494_v10 = vcombine.high %v218_v7, %v222_v8  ;;  %v216_v12 = vld [vmem:[#allocation2 + $0x380] sm:$0xff]  ;;  %v1578_v8 = vld [vmem:[#allocation5 + $0x50] ss:$8 sps:$4 sm:$0xff]  }
  0xac   :  { %967 = vmatpush1.bf16.xpose.msra.mxu0 %v1381_v28  ;;  %998 = vmatprep.mubr.bf16.mxu0 %v101_v30  ;;  %v168_v28 = vld [vmem:[#allocation2 + $0x200] sm:$0xff] }
  0xad   :  { %968 = vmatprep.subr.bf16.mxu0 %v1390_v29  ;;  %v172_v29 = vld [vmem:[#allocation2 + $0x220] sm:$0xff] }
  0xae   :  { %v1442_v30 = vcombine.high %v168_v28, %v172_v29  ;;  %v1441_v31 = vcombine.low %v168_v28, %v172_v29  ;;  %v107_v29 = vld [vmem:[#allocation2 + $0x18] sm:$0xff] }
  0xb0   :  { %900 = vmatprep.subr.bf16.mxu1 %v1442_v30  ;;  %v111_v30 = vld [vmem:[#allocation2 + $0x38] sm:$0xff] }
  0xb1   :  { %901 = vmatpush1.bf16.xpose.msra.mxu1 %v1441_v31  ;;  %v61_v31 = vrot.slane %v1756_v17, %v1751_v16  ;;  %v1384_v33 = vcombine.high %v107_v29, %v111_v30 }
  0xb4   :  { %969 = vmatpush1.bf16.xpose.msra.mxu0 %v1389_v21  ;;  %v180_v21 = vld [vmem:[#allocation2 + $0x260] sm:$0xff] }
  0xb5   :  { %970 = vmatprep.subr.bf16.mxu0 %v1398_v37  ;;  %v1450_v37 = vcombine.high %v176_v36, %v180_v21  ;;  %v1449_v38 = vcombine.low %v176_v36, %v180_v21  ;;  %v96_v21 = vpack.c.bf16 %v61_v31, %v61_v31 }
  0xb7   :  { %902 = vmatprep.subr.bf16.mxu1 %v1450_v37 }
  0xb9   :  { %903 = vmatpush1.bf16.xpose.msra.mxu1 %v1449_v38  ;;  %v115_v38 = vld [vmem:[#allocation2 + $0x58] sm:$0xff] }
  0xba   :  { %v1391_v47 = vcombine.low %v115_v38, %v119_v39 }
  0xbc   :  { %971 = vmatpush1.bf16.xpose.msra.mxu0 %v1397_v44  ;;  %v188_v44 = vld [vmem:[#allocation2 + $0x2a0] sm:$0xff] }
  0xbd   :  { %972 = vmatprep.subr.bf16.mxu0 %v1406_v45  ;;  %v1458_v45 = vcombine.high %v184_v43, %v188_v44  ;;  %v1457_v46 = vcombine.low %v184_v43, %v188_v44  ;;  %v1563_v43 = vld [vmem:[#allocation5] ss:$8 sps:$4 sm:$0xff]   ;;  %v1565_v44 = vld [vmem:[#allocation5 + $0x4] ss:$8 sps:$4 sm:$0xff]  }
  0xbf   :  { %904 = vmatprep.subr.bf16.mxu1 %v1458_v45  ;;  %v123_v45 = vld [vmem:[#allocation2 + $0x98] sm:$0xff] }
  0xc1   :  { %905 = vmatpush1.bf16.xpose.msra.mxu1 %v1457_v46  ;;  %v127_v46 = vld [vmem:[#allocation2 + $0xb8] sm:$0xff] }
  0xc2   :  { %v1400_v48 = vcombine.high %v123_v45, %v127_v46 }
  0xc4   :  { %973 = vmatpush1.bf16.xpose.msra.mxu0 %v1405_v52  ;;  %v196_v52 = vld [vmem:[#allocation2 + $0x2e0] sm:$0xff] }
  0xc5   :  { %974 = vmatprep.subr.bf16.mxu0 %v1414_v53  ;;  %v1466_v53 = vcombine.high %v192_v51, %v196_v52  ;;  %v1465_v54 = vcombine.low %v192_v51, %v196_v52  ;;  %v135_v51 = vld [vmem:[#allocation2 + $0xf8] sm:$0xff]  ;;  %v1399_v52 = vcombine.low %v123_v45, %v127_v46 }
  0xc7   :  { %906 = vmatprep.subr.bf16.mxu1 %v1466_v53  ;;  %v1408_v53 = vcombine.high %v131_v23, %v135_v51 }
  0xc9   :  { %907 = vmatpush1.bf16.xpose.msra.mxu1 %v1465_v54  ;;  %v1569_v54 = vld [vmem:[#allocation5 + $0x20] ss:$8 sps:$4 sm:$0xff]  }
  0xcc   :  { %975 = vmatpush1.bf16.xpose.msra.mxu0 %v1413_v60  ;;  %v204_v60 = vld [vmem:[#allocation2 + $0x320] sm:$0xff] }
  0xcd   :  { %976 = vmatprep.subr.bf16.mxu0 %v1422_v61  ;;  %v1474_v61 = vcombine.high %v200_v59, %v204_v60  ;;  %v1473_v62 = vcombine.low %v200_v59, %v204_v60  ;;  %v1572_v60 = vld [vmem:[#allocation5 + $0x30] ss:$8 sps:$4 sm:$0xff]  }
  0xcf   :  { %908 = vmatprep.subr.bf16.mxu1 %v1474_v61  ;;  %v1577_v61 = vld [vmem:[#allocation5 + $0x44] ss:$8 sps:$4 sm:$0xff]  }
  0xd1   :  { %909 = vmatpush1.bf16.xpose.msra.mxu1 %v1473_v62  ;;  %v147_v62 = vld [vmem:[#allocation2 + $0x158] sm:$0xff] }
  0xd4   :  { %977 = vmatpush1.bf16.xpose.msra.mxu0 %v1421_v4  ;;  %v212_v4 = vld [vmem:[#allocation2 + $0x360] sm:$0xff] }
  0xd5   :  { %978 = vmatprep.subr.bf16.mxu0 %v1430_v5  ;;  %v1482_v5 = vcombine.high %v208_v3, %v212_v4  ;;  %v1481_v6 = vcombine.low %v208_v3, %v212_v4  ;;  %v1580_v3 = vld [vmem:[#allocation5 + $0x54] ss:$8 sps:$4 sm:$0xff]  }
  0xd6   :  { %v155_v4 = vld [vmem:[#allocation2 + $0x198] sm:$0xff] }
  0xd7   :  { %910 = vmatprep.subr.bf16.mxu1 %v1482_v5  ;;  %v159_v5 = vld [vmem:[#allocation2 + $0x1b8] sm:$0xff] }
  0xd8   :  { %v1432_v7 = vcombine.high %v155_v4, %v159_v5 }
  0xd9   :  { %911 = vmatpush1.bf16.xpose.msra.mxu1 %v1481_v6  ;;  %v1423_v6 = vcombine.low %v147_v62, %v151_v63 }
  0xdc   :  { %979 = vmatpush1.bf16.xpose.msra.mxu0 %v1429_v13  ;;  %v220_v13 = vld [vmem:[#allocation2 + $0x3a0] sm:$0xff] }
  0xdd   :  { %980 = vmatprep.subr.bf16.mxu0 %v1438_v14  ;;  %v1490_v14 = vcombine.high %v216_v12, %v220_v13  ;;  %v1489_v15 = vcombine.low %v216_v12, %v220_v13  ;;  %v167_v12 = vld [vmem:[#allocation2 + $0x1f8] sm:$0xff]  ;;  %v1431_v13 = vcombine.low %v155_v4, %v159_v5 }
  0xdf   :  { %912 = vmatprep.subr.bf16.mxu1 %v1490_v14 }
  0xe1   :  { %913 = vmatpush1.bf16.xpose.msra.mxu1 %v1489_v15  ;;  %v1581_v15 = vld [vmem:[#allocation5 + $0x60] ss:$8 sps:$4 sm:$0xff]  }
  0xe4   :  { %981 = vmatpush1.bf16.xpose.msra.mxu0 %v1437_v26  ;;  %v228_v26 = vld [vmem:[#allocation2 + $0x3e0] sm:$0xff] }
  0xe5   :  { %982 = vmatprep.subr.bf16.mxu0 %v1446_v27  ;;  %v1498_v27 = vcombine.high %v224_v25, %v228_v26  ;;  %v1497_v28 = vcombine.low %v224_v25, %v228_v26  ;;  %v1584_v26 = vld [vmem:[#allocation5 + $0x70] ss:$8 sps:$4 sm:$0xff]  }
  0xe7   :  { %914 = vmatprep.subr.bf16.mxu1 %v1498_v27  ;;  %v1589_v27 = vld [vmem:[#allocation5 + $0x84] ss:$8 sps:$4 sm:$0xff]  }
  0xe9   :  { %915 = vmatpush1.bf16.xpose.msra.mxu1 %v1497_v28  ;;  %v179_v28 = vld [vmem:[#allocation2 + $0x258] sm:$0xff] }
  0xea   :  { %1257 = vmatprep.subr.bf16.mxu1 %v1565_v44  ;;  %v203_v44 = vld [vmem:[#allocation2 + $0x318] sm:$0xff] }
  0xec   :  { %983 = vmatpush1.bf16.xpose.msra.mxu0 %v1445_v34  ;;  %v69_v34 = vcombine.high %v61_v31, %v61_v31 }
  0xed   :  { %984 = vmatprep.subr.bf16.mxu0 %v1454_v35  ;;  %v71_v35 = vcombine.high %v1768_v22, %v1768_v22  ;;  %v1392_v22 = vcombine.high %v115_v38, %v119_v39  ;;  %v1590_v38 = vld [vmem:[#allocation5 + $0x90] ss:$8 sps:$4 sm:$0xff]   ;;  %v1595_v39 = vld [vmem:[#allocation5 + $0xa4] ss:$8 sps:$4 sm:$0xff]  }
  0xee   :  { %v97_v36 = vpack.c.bf16 %v69_v34, %v69_v34  ;;  %v187_v34 = vld [vmem:[#allocation2 + $0x298] sm:$0xff] }
  0xef   :  { %v1783_v37 = vrot.slane %v71_v35, %v1751_v16  ;;  %v1568_v16 = vld [vmem:[#allocation5 + $0x14] ss:$8 sps:$4 sm:$0xff]  }
  0xf0   :  { %916 = vmatprep.mubr.bf16.mxu1 %v97_v36  ;;  %v191_v35 = vld [vmem:[#allocation2 + $0x2b8] sm:$0xff] }
  0xf1   :  { %917 = vmatmul.mubr.bf16.vlgmr.msra.gmra.mrb[0].mxu1 %v96_v21  ;;  %v87_v17 = vcombine.high %v1783_v37, %v1783_v37  ;;  %v1464_v21 = vcombine.high %v187_v34, %v191_v35 }
  0xf2   :  { %1258 = vmatpush1.bf16.xpose.msra.mxu1 %v1563_v43  ;;  %v1598_v43 = vld [vmem:[#allocation5 + $0xb4] ss:$8 sps:$4 sm:$0xff]  }
  0xf3   :  { %1259 = vmatprep.subr.bf16.mxu1 %v1568_v16  ;;  %v207_v16 = vld [vmem:[#allocation2 + $0x338] sm:$0xff] }
  0xf4   :  { %985 = vmatpush1.bf16.xpose.msra.mxu0 %v1453_v41  ;;  %v1383_v41 = vcombine.low %v107_v29, %v111_v30  ;;  %v183_v29 = vld [vmem:[#allocation2 + $0x278] sm:$0xff]  ;;  %v1480_v46 = vcombine.high %v203_v44, %v207_v16 }
  0xf5   :  { %986 = vmatprep.subr.bf16.mxu0 %v1462_v42  ;;  %v103_v42 = vpack.c.bf16 %v87_v17, %v87_v17  ;;  %v1456_v31 = vcombine.high %v179_v28, %v183_v29  ;;  %v1455_v36 = vcombine.low %v179_v28, %v183_v29  ;;  %v195_v17 = vld [vmem:[#allocation2 + $0x2d8] sm:$0xff] }
  0xfc   :  { %987 = vmatpush1.bf16.xpose.msra.mxu0 %v1461_v49  ;;  %v1566_v49 = vld [vmem:[#allocation5 + $0x10] ss:$8 sps:$4 sm:$0xff]  }
  0xfd   :  { %988 = vmatprep.subr.bf16.mxu0 %v1470_v50  ;;  %v1571_v50 = vld [vmem:[#allocation5 + $0x24] ss:$8 sps:$4 sm:$0xff]   ;;  %1260 = vmatpush1.bf16.xpose.msra.mxu1 %v1566_v49  ;;  %v211_v49 = vld [vmem:[#allocation2 + $0x358] sm:$0xff] }
  0xfe   :  { %1261 = vmatprep.subr.bf16.mxu1 %v1571_v50  ;;  %v215_v50 = vld [vmem:[#allocation2 + $0x378] sm:$0xff] }
 0x104   :  { %989 = vmatpush1.bf16.xpose.msra.mxu0 %v1469_v57  ;;  %v143_v57 = vld [vmem:[#allocation2 + $0x138] sm:$0xff] }
 0x105   :  { %990 = vmatprep.subr.bf16.mxu0 %v1478_v58  ;;  %1262 = vmatpush1.bf16.xpose.msra.mxu1 %v1569_v54  ;;  %v1407_v58 = vcombine.low %v131_v23, %v135_v51  ;;  %v1416_v59 = vcombine.high %v139_v56, %v143_v57  ;;  %v1415_v0 = vcombine.low %v139_v56, %v143_v57  ;;  %v219_v54 = vld [vmem:[#allocation2 + $0x398] sm:$0xff] }
 0x106   :  { %1263 = vmatprep.subr.bf16.mxu1 %v1574_v55  ;;  %v1479_v23 = vcombine.low %v203_v44, %v207_v16  ;;  %v1488_v51 = vcombine.high %v211_v49, %v215_v50  ;;  %v223_v55 = vld [vmem:[#allocation2 + $0x3b8] sm:$0xff]  ;;  %v1487_v56 = vcombine.low %v211_v49, %v215_v50 }
 0x107   :  { %v1496_v57 = vcombine.high %v219_v54, %v223_v55 }
 0x10c   :  { %991 = vmatpush1.bf16.xpose.msra.mxu0 %v1477_v1  ;;  %v1424_v1 = vcombine.high %v147_v62, %v151_v63  ;;  %v1495_v62 = vcombine.low %v219_v54, %v223_v55 }
 0x10d   :  { %992 = vmatprep.subr.bf16.mxu0 %v1486_v2  ;;  %1264 = vmatpush1.bf16.xpose.msra.mxu1 %v1572_v60  ;;  %v1575_v2 = vld [vmem:[#allocation5 + $0x40] ss:$8 sps:$4 sm:$0xff]   ;;  %v227_v60 = vld [vmem:[#allocation2 + $0x3d8] sm:$0xff] }
 0x10e   :  { %1265 = vmatprep.subr.bf16.mxu1 %v1577_v61  ;;  %v231_v61 = vld [vmem:[#allocation2 + $0x3f8] sm:$0xff] }
 0x10f   :  { %v1504_v63 = vcombine.high %v227_v60, %v231_v61 }
 0x114   :  { %993 = vmatpush1.bf16.xpose.msra.mxu0 %v1485_v9  ;;  %v1583_v9 = vld [vmem:[#allocation5 + $0x64] ss:$8 sps:$4 sm:$0xff]  }
 0x115   :  { %994 = vmatprep.subr.bf16.mxu0 %v1494_v10  ;;  %1266 = vmatpush1.bf16.xpose.msra.mxu1 %v1575_v2  ;;  %v163_v10 = vld [vmem:[#allocation2 + $0x1d8] sm:$0xff]  ;;  %v102_v2 = vpack.c.bf16 %v1783_v37, %v1783_v37 }
 0x116   :  { %1267 = vmatprep.subr.bf16.mxu1 %v1580_v3  ;;  %v1440_v14 = vcombine.high %v163_v10, %v167_v12 }
 0x11c   :  { %995 = vmatpush1.bf16.xpose.msra.mxu0 %v1493_v20  ;;  %v175_v20 = vld [vmem:[#allocation2 + $0x238] sm:$0xff] }
 0x11d   :  { %996 = vmatprep.subr.bf16.mxu0 %v1502_v24  ;;  %1268 = vmatpush1.bf16.xpose.msra.mxu1 %v1578_v8  ;;  %v1439_v24 = vcombine.low %v163_v10, %v167_v12  ;;  %v1448_v25 = vcombine.high %v171_v19, %v175_v20  ;;  %v1447_v30 = vcombine.low %v171_v19, %v175_v20  ;;  %v1608_v8 = vld [vmem:[#allocation5 + $0xf0] ss:$8 sps:$4 sm:$0xff]   ;;  %v232_v10 = vld [vmem:[%s1824_s4] ss:$4 sm:$0x3]  ;;  %v240_v12 = vsub.s32 1, %v1748_v11 }
 0x11e   :  { %1269 = vmatprep.subr.bf16.mxu1 %v1583_v9  ;;  %v236_v9 = vsub.s32 0, %v1748_v11  ;;  %v1613_v11 = vld [vmem:[%s1823_s3 + $0x4] ss:$8 sps:$4 sm:$0x1f]  }
 0x124   :  { %997 = vmatpush1.bf16.xpose.msra.mxu0 %v1501_v32  ;;  %v1587_v32 = vld [vmem:[#allocation5 + $0x80] ss:$8 sps:$4 sm:$0xff]  }
 0x125   :  { %1007 = vmatprep.subr.bf16.mxu0 %v1384_v33  ;;  %1270 = vmatpush1.bf16.xpose.msra.mxu1 %v1581_v15  ;;  %v1592_v33 = vld [vmem:[#allocation5 + $0x94] ss:$8 sps:$4 sm:$0xff]  }
 0x126   :  { %1271 = vmatprep.subr.bf16.mxu1 %v1586_v18 }
 0x12b   :  { %999 = vmatmul.mubr.bf16.vlgmr.msra.gmra.mrb[0].mxu0 %v100_v40  ;;  %v199_v40 = vld [vmem:[#allocation2 + $0x2f8] sm:$0xff] }
 0x12c   :  { %1008 = vmatpush1.bf16.xpose.msra.mxu0 %v1383_v41  ;;  %1039 = vmatprep.mubr.bf16.mxu0 %v103_v42  ;;  %v1463_v41 = vcombine.low %v187_v34, %v191_v35  ;;  %v1472_v42 = vcombine.high %v195_v17, %v199_v40  ;;  %v1471_v45 = vcombine.low %v195_v17, %v199_v40 }
 0x12d   :  { %1009 = vmatprep.subr.bf16.mxu0 %v1392_v22  ;;  %1272 = vmatpush1.bf16.xpose.msra.mxu1 %v1584_v26  ;;  %v1593_v22 = vld [vmem:[#allocation5 + $0xa0] ss:$8 sps:$4 sm:$0xff]  }
 0x12e   :  { %1273 = vmatprep.subr.bf16.mxu1 %v1589_v27 }
 0x134   :  { %1010 = vmatpush1.bf16.xpose.msra.mxu0 %v1391_v47  ;;  %v1596_v47 = vld [vmem:[#allocation5 + $0xb0] ss:$8 sps:$4 sm:$0xff]  }
 0x135   :  { %1011 = vmatprep.subr.bf16.mxu0 %v1400_v48  ;;  %1274 = vmatpush1.bf16.xpose.msra.mxu1 %v1587_v32  ;;  %v1601_v48 = vld [vmem:[#allocation5 + $0xc4] ss:$8 sps:$4 sm:$0xff]  }
 0x136   :  { %1275 = vmatprep.subr.bf16.mxu1 %v1592_v33  ;;  %v1505_v32 = vld [vmem:[%s1824_s4 + $0x1] ss:$4 sm:$0x3] }
 0x137   :  { %v1090_v33 = vrot.slane %v1505_v32, %v236_v9  ;;  %v1094_v34 = vrot.slane %v1505_v32, %v240_v12 }
 0x13c   :  { %1012 = vmatpush1.bf16.xpose.msra.mxu0 %v1399_v52  ;;  %v1599_v52 = vld [vmem:[#allocation5 + $0xc0] ss:$8 sps:$4 sm:$0xff]  }
 0x13d   :  { %1013 = vmatprep.subr.bf16.mxu0 %v1408_v53  ;;  %1276 = vmatpush1.bf16.xpose.msra.mxu1 %v1590_v38  ;;  %v1604_v53 = vld [vmem:[#allocation5 + $0xd4] ss:$8 sps:$4 sm:$0xff]  }
 0x13e   :  { %1277 = vmatprep.subr.bf16.mxu1 %v1595_v39 }
 0x144   :  { %1014 = vmatpush1.bf16.xpose.msra.mxu0 %v1407_v58  ;;  %v1602_v58 = vld [vmem:[#allocation5 + $0xd0] ss:$8 sps:$4 sm:$0xff]  }
 0x145   :  { %1015 = vmatprep.subr.bf16.mxu0 %v1416_v59  ;;  %1278 = vmatpush1.bf16.xpose.msra.mxu1 %v1593_v22  ;;  %v1607_v59 = vld [vmem:[#allocation5 + $0xe4] ss:$8 sps:$4 sm:$0xff]  }
 0x146   :  { %1279 = vmatprep.subr.bf16.mxu1 %v1598_v43  ;;  %v1538_v43 = vld [vmem:[%s1824_s4 + $0x2] ss:$0 sm:$0xff] }
 0x14c   :  { %1016 = vmatpush1.bf16.xpose.msra.mxu0 %v1415_v0  ;;  %v1605_v0 = vld [vmem:[#allocation5 + $0xe0] ss:$8 sps:$4 sm:$0xff]  }
 0x14d   :  { %1017 = vmatprep.subr.bf16.mxu0 %v1424_v1  ;;  %1280 = vmatpush1.bf16.xpose.msra.mxu1 %v1596_v47  ;;  %v1503_v1 = vcombine.low %v227_v60, %v231_v61 }
 0x14e   :  { %1281 = vmatprep.subr.bf16.mxu1 %v1601_v48 }
 0x154   :  { %1018 = vmatpush1.bf16.xpose.msra.mxu0 %v1423_v6 }
 0x155   :  { %1019 = vmatprep.subr.bf16.mxu0 %v1432_v7  ;;  %1282 = vmatpush1.bf16.xpose.msra.mxu1 %v1599_v52  ;;  %v1610_v7 = vld [vmem:[#allocation5 + $0xf4] ss:$8 sps:$4 sm:$0xff]  }
 0x156   :  { %1283 = vmatprep.subr.bf16.mxu1 %v1604_v53 }
 0x15c   :  { %1020 = vmatpush1.bf16.xpose.msra.mxu0 %v1431_v13  ;;  %v237_v13 = vrot.slane %v232_v10, %v236_v9 }
 0x15d   :  { %1021 = vmatprep.subr.bf16.mxu0 %v1440_v14  ;;  %1284 = vmatpush1.bf16.xpose.msra.mxu1 %v1602_v58  ;;  %v241_v14 = vrot.slane %v232_v10, %v240_v12 }
 0x15e   :  { %1285 = vmatprep.subr.bf16.mxu1 %v1607_v59 }
 0x164   :  { %1022 = vmatpush1.bf16.xpose.msra.mxu0 %v1439_v24 }
 0x165   :  { %1023 = vmatprep.subr.bf16.mxu0 %v1448_v25  ;;  %1286 = vmatpush1.bf16.xpose.msra.mxu1 %v1605_v0 }
 0x166   :  { %1287 = vmatprep.subr.bf16.mxu1 %v1610_v7 }
 0x16c   :  { %1024 = vmatpush1.bf16.xpose.msra.mxu0 %v1447_v30 }
 0x16d   :  { %1025 = vmatprep.subr.bf16.mxu0 %v1456_v31  ;;  %1288 = vmatpush1.bf16.xpose.msra.mxu1 %v1608_v8  ;;  %v1611_v31 = vld [vmem:[%s1823_s3] ss:$8 sps:$4 sm:$0x1f]  }
 0x16e   :  { %1319 = vmatprep.subr.bf16.mxu1 %v1613_v11 }
 0x174   :  { %1026 = vmatpush1.bf16.xpose.msra.mxu0 %v1455_v36 }
 0x175   :  { %1027 = vmatprep.subr.bf16.mxu0 %v1464_v21 }
 0x17c   :  { %1028 = vmatpush1.bf16.xpose.msra.mxu0 %v1463_v41 }
 0x17d   :  { %1029 = vmatprep.subr.bf16.mxu0 %v1472_v42 }
 0x184   :  { %1030 = vmatpush1.bf16.xpose.msra.mxu0 %v1471_v45 }
 0x185   :  { %1031 = vmatprep.subr.bf16.mxu0 %v1480_v46 }
 0x18c   :  { %1032 = vmatpush1.bf16.xpose.msra.mxu0 %v1479_v23 }
 0x18d   :  { %1033 = vmatprep.subr.bf16.mxu0 %v1488_v51 }
 0x194   :  { %1034 = vmatpush1.bf16.xpose.msra.mxu0 %v1487_v56 }
 0x195   :  { %1035 = vmatprep.subr.bf16.mxu0 %v1496_v57 }
 0x19c   :  { %1036 = vmatpush1.bf16.xpose.msra.mxu0 %v1495_v62 }
 0x19d   :  { %1037 = vmatprep.subr.bf16.mxu0 %v1504_v63 }
 0x1a4   :  { %1038 = vmatpush1.bf16.xpose.msra.mxu0 %v1503_v1 }
 0x1ab   :  { %1040 = vmatmul.mubr.bf16.vlgmr.msra.gmra.mrb[0].mxu0 %v102_v2 }
 0x1c4   :  { %v918_v3 = vpop.f32.mrb[0].mxu1 }
 0x1c5   :  { %v920_v4 = vpop.f32.mrb[1].mxu1  ;;  %v919_v37 = vadd.f32 %v918_v3, %v237_v13 }
 0x1c6   :  { %v922_v5 = vpop.f32.mrb[2].mxu1  ;;  %v921_v15 = vadd.f32 %v920_v4, %v241_v14 }
 0x1c7   :  { %v923_v6 = vpop.f32.mrb[3].mxu1 }
 0x27e   :  { %v1041_v18 = vpop.f32.mrb[0].mxu0 }
 0x27f   :  { %v1542_v19 = vadd.f32 %v1041_v18, %v919_v37  ;;  %v1043_v20 = vpop.f32.mrb[1].mxu0 }
 0x280   :  { %v1544_v24 = vadd.f32 %v1043_v20, %v921_v15  ;;  %v1045_v25 = vpop.f32.mrb[2].mxu0 }
 0x281   :  { %v1048_v26 = vmax.f32 %v1542_v19, 0.0  ;;  %v1046_v27 = vpop.f32.mrb[3].mxu0 }
 0x282   :  { %v1049_v28 = vmax.f32 %v1544_v24, 0.0 }
 0x283   :  { %v1050_v30 = vpack.c.bf16 %v1048_v26, %v1048_v26 }
 0x284   :  { %v1051_v29 = vpack.c.bf16 %v1049_v28, %v1049_v28 }
 0x286   :  { %1289 = vmatprep.mubr.bf16.mxu1 %v1051_v29 }
 0x287   :  { %1290 = vmatmul.mubr.bf16.vlgmr.msra.gmra.mrb[4].mxu1 %v1050_v30 }
 0x288   :  { %1320 = vmatpush1.bf16.xpose.msra.mxu1 %v1611_v31 }
 0x35a   :  { %v1291_v35 = vpop.f32.mrb[4].mxu1 }
 0x35b   :  { %v1292_v36 = vadd.f32 %v1291_v35, %v1090_v33  ;;  %v1293_v21 = vpop.f32.mrb[5].mxu1 }
 0x35c   :  { %v1294_v38 = vadd.f32 %v1293_v21, %v1094_v34  ;;  %v1295_v39 = vpop.f32.mrb[6].mxu1 }
 0x35d   :  { %v1298_v17 = vmax.f32 %v1292_v36, 0.0  ;;  %v1296_v40 = vpop.f32.mrb[7].mxu1 }
 0x35e   :  { %v1299_v41 = vmax.f32 %v1294_v38, 0.0 }
 0x35f   :  { %v1300_v22 = vpack.c.bf16 %v1298_v17, %v1298_v17 }
 0x360   :  { %v1301_v42 = vpack.c.bf16 %v1299_v41, %v1299_v41 }
 0x362   :  { %1351 = vmatprep.mubr.bf16.mxu1 %v1301_v42 }
 0x363   :  { %1352 = vmatmul.mubr.bf16.vlgmr.msra.gmra.mrb[8].mxu1 %v1300_v22 }
 0x436   :  { %v1353_v44 = vpop.f32.mrb[8].mxu1 }
 0x437   :  { %v1354_v16 = vadd.f32 %v1538_v43, %v1353_v44  ;;  %v1355_v45 = vpop.f32.mrb[9].mxu1 }
 0x438   :  { %v1356_v46 = vpop.f32.mrb[10].mxu1 }
 0x439   :  { %v1357_v47 = vpop.f32.mrb[11].mxu1  ;;  %1360 = vst.msk [vmem:[#allocation7] sm:$0x3] %vm1359_vm0, %v1354_v16 }
 0x43a   :  { %1669 = shalt.err (!%p1666_p6)
}
 0x43b   :  { %s1670_s4 = scalar_lea.hbm %s1825_s5, 32 }
 0x43c   :  { %p1671_p7 = scmp.ne.s32.totalorder %s1825_s5, %s1670_s4  ;;  %p1674_p8 = scmp.lt.u32.totalorder %s1670_s4, %s1825_s5 }
 0x43e   :  { %p1676_p9 = pnand %p1674_p8, %p1671_p7 }
 0x440   :  { %1679 = shalt.err (!%p1676_p9)
}
 0x441   :  { %1370 = dma.vmem_to_hbm [thread:$0]  %s1368_s7, 32, %s1825_s5, [#allocation4]  }
 0x442   :  { %1684 = dma.done.wait [#allocation4], 32  }
 0x443   :  { %1685 = vsyncadd [#allocation4], 4294967264 }
 0x444   :  { %1374 = vsyncpa [#allocation3], 1 }
 0x445   :  { %1375 = vsyncpa [#allocation6], 1 }
 0x446   :  { %1376 = vsyncpa [#allocation4], 1 }

</bundles_post_ra>
